<compile_context>
chip_gen: v6e
topology: v6e:2x2x1
jax: 0.10.0
libtpu: 0.0.40
codegen_flags: <defaults>
</compile_context>

<pallas_src>
import functools

import jax
import jax.numpy as jnp
from jax.experimental import pallas as pl
from jax.experimental.pallas import tpu as pltpu

LANES = 128


def _cdiv(a, b):
    return -(-a // b)


def _round_up(a, b):
    return _cdiv(a, b) * b


def _chip_config():
    """Returns (tile_r_max, num_shards, vmem_limit_bytes) per TPU generation."""
    try:
        kind = jax.devices()[0].device_kind.lower()
    except Exception:
        kind = ""
    if "v7" in kind:
        # 2 TensorCores, 3.2 TB/s HBM, 64 MiB VMEM (32 MiB scoped default):
        # big tiles + shard the stream across both cores.
        return 8192, 2, 32 * 1024 * 1024
    if "v6" in kind:
        return 4096, 1, 32 * 1024 * 1024
    if "v5" in kind:
        # v5e scoped-VMEM default is only 16 MiB; raise it explicitly so the
        # 4096-row tile (8 MiB double-buffered) has headroom.
        return 4096, 1, 24 * 1024 * 1024
    # Unknown chip: conservative tile; 2 shards is harmless on 1-TC parts.
    return 4096, 2, 32 * 1024 * 1024


def _dice_kernel(x_ref, t_ref, o_ref, *, tile_r, blocks_per_shard,
                 rows_valid, any_mask):
    i = pl.program_id(1)

    @pl.when(i == 0)
    def _init():
        o_ref[...] = jnp.zeros_like(o_ref)

    p = jax.nn.sigmoid(x_ref[...].astype(jnp.float32))
    t = t_ref[...].astype(jnp.float32)

    def _accumulate(pp, tt):
        # (tile_r, 128) -> (8, 128) with pure VPU vreg adds (no XLU / scalar
        # round-trip per step); final cross-lane reduce is in the wrapper.
        o_ref[0, 0] += (pp * tt).reshape(-1, 8, LANES).sum(axis=0)
        o_ref[0, 1] += (pp + tt).reshape(-1, 8, LANES).sum(axis=0)

    if not any_mask:
        _accumulate(p, t)
    else:
        s = pl.program_id(0)
        block_row0 = (s * blocks_per_shard + i) * tile_r
        is_boundary = block_row0 + tile_r > rows_valid

        @pl.when(jnp.logical_not(is_boundary))
        def _fast():
            _accumulate(p, t)

        @pl.when(is_boundary)
        def _masked():
            # Only boundary blocks (and clamped duplicate blocks of the last
            # shard) pay for the mask; it is a single row-index compare since
            # the kernel input is always a whole number of 128-lane rows.
            # jnp.where also blocks NaN propagation from garbage rows past
            # the end of a partial last block.
            row = block_row0 + jax.lax.broadcasted_iota(
                jnp.int32, (tile_r, LANES), 0)
            keep = row < rows_valid
            zero = jnp.zeros_like(p)
            _accumulate(jnp.where(keep, p, zero), jnp.where(keep, t, zero))


@jax.jit
def soft_dice_loss(logits, targets):
    """Pallas implementation of SoftDiceLoss.forward. Returns a scalar f32."""
    smooth = jnp.float32(1.0)
    x = logits.reshape(-1)          # native dtype; kernel upcasts in VMEM
    t = targets.reshape(-1)
    n = x.shape[0]

    # Fold the sub-128-element remainder in the wrapper (tiny slice) instead
    # of jnp.pad-ing the whole flattened array (full HBM read+write of both
    # inputs before the kernel even runs).
    rem = n % LANES
    n_main = n - rem
    tail_inter = jnp.float32(0.0)
    tail_sum = jnp.float32(0.0)
    if rem:
        xt = jax.nn.sigmoid(x[n_main:].astype(jnp.float32))
        tt = t[n_main:].astype(jnp.float32)
        tail_inter = jnp.sum(xt * tt)
        tail_sum = jnp.sum(xt) + jnp.sum(tt)
        if n_main == 0:
            return 1.0 - (2.0 * tail_inter + smooth) / (tail_sum + smooth)
        # Aligned prefix for the kernel (no padded-region writes and the hot
        # kernel loop stays free of per-lane masking).
        x = x[:n_main]
        t = t[:n_main]

    rows = n_main // LANES
    x2 = x.reshape(rows, LANES)
    t2 = t.reshape(rows, LANES)

    tile_r_max, num_shards, vmem_limit = _chip_config()

    # dtype-aware tiling: sub-32-bit inputs pack 2/4 rows per sublane, so the
    # row tile must be a multiple of 16/32; also double the tile so the
    # (halved) bytes/step still amortize the fixed ~0.35us per-step overhead.
    itemsizes = (jnp.dtype(x2.dtype).itemsize, jnp.dtype(t2.dtype).itemsize)
    row_align = max(8, 32 // min(itemsizes))
    if max(itemsizes) <= 2:
        tile_r_max *= 2
    tile_r = min(tile_r_max, _round_up(rows, row_align))

    num_blocks = _cdiv(rows, tile_r)
    num_shards = max(1, min(num_shards, num_blocks))
    blocks_per_shard = _cdiv(num_blocks, num_shards)
    covered_rows = num_shards * blocks_per_shard * tile_r
    any_mask = covered_rows != rows

    def in_map(s, i):
        # Clamp: tail blocks of the last shard that run past the data re-read
        # the last valid block; the (gated) in-kernel mask zeroes them.
        return (jnp.minimum(s * blocks_per_shard + i, num_blocks - 1), 0)

    kernel = functools.partial(
        _dice_kernel, tile_r=tile_r, blocks_per_shard=blocks_per_shard,
        rows_valid=rows, any_mask=any_mask)

    bytes_accessed = n_main * (itemsizes[0] + itemsizes[1]) \
        + num_shards * 2 * 8 * LANES * 4
    cost = pl.CostEstimate(flops=5 * n_main, transcendentals=n_main,
                           bytes_accessed=bytes_accessed)

    # TODO(synk): if an xprof trace on v7x shows exposed DMA, add
    # pipeline_mode=pl.Buffered(3) to the two input BlockSpecs.
    parts = pl.pallas_call(
        kernel,
        out_shape=jax.ShapeDtypeStruct((num_shards, 2, 8, LANES), jnp.float32),
        grid_spec=pltpu.PrefetchScalarGridSpec(
            num_scalar_prefetch=0,
            grid=(num_shards, blocks_per_shard),
            in_specs=[
                pl.BlockSpec((tile_r, LANES), in_map),
                pl.BlockSpec((tile_r, LANES), in_map),
            ],
            out_specs=pl.BlockSpec((1, 2, 8, LANES),
                                   lambda s, i: (s, 0, 0, 0)),
        ),
        compiler_params=pltpu.CompilerParams(
            dimension_semantics=("parallel", "arbitrary"),
            vmem_limit_bytes=vmem_limit),
        cost_estimate=cost,
    )(x2, t2)

    intersection = jnp.sum(parts[:, 0]) + tail_inter
    denom = jnp.sum(parts[:, 1]) + tail_sum
    return 1.0 - (2.0 * intersection + smooth) / (denom + smooth)


def _reference(logits, targets):
    p = jax.nn.sigmoid(logits.astype(jnp.float32)).reshape(-1)
    t = targets.astype(jnp.float32).reshape(-1)
    smooth = 1.0
    inter = jnp.sum(p * t)
    return 1.0 - (2.0 * inter + smooth) / (jnp.sum(p) + jnp.sum(t) + smooth)


if __name__ == "__main__":
    key = jax.random.PRNGKey(0)
    k1, k2 = jax.random.split(key)
    # NCHW, small shapes: batch=2, channels=4, spatial=16x16
    logits = jax.random.normal(k1, (2, 4, 16, 16), dtype=jnp.float32)
    targets = (jax.random.uniform(k2, (2, 4, 16, 16)) > 0.5).astype(jnp.float32)

    loss = jax.block_until_ready(soft_dice_loss(logits, targets))
    ref = jax.block_until_ready(_reference(logits, targets))
    assert jnp.allclose(loss, ref, atol=1e-5, rtol=1e-5), (loss, ref)
    print("KERNEL_OK")
</pallas_src>

<mosaic_0001>
module attributes {stable_mosaic.version = 11 : i64} {
  func.func @_dice_kernel(%arg0: i32, %arg1: i32, %arg2: memref<16x128xf32, #tpu.memory_space<vmem>>, %arg3: memref<16x128xf32, #tpu.memory_space<vmem>>, %arg4: memref<1x2x8x128xf32, #tpu.memory_space<vmem>>) attributes {dimension_semantics = [#tpu.dimension_semantics<parallel>, #tpu.dimension_semantics<arbitrary>], iteration_bounds = array<i64: 1, 1>, scalar_prefetch = 0 : i64, scratch_operands = 0 : i64, tpu.core_type = #tpu.core_type<tc>, window_params = [{transform_indices = @transform_0, window_bounds = array<i64: 16, 128>}, {transform_indices = @transform_1, window_bounds = array<i64: 16, 128>}, {transform_indices = @transform_2, window_bounds = array<i64: 1, 2, 8, 128>}]} {
    %c0_i32 = arith.constant 0 : i32
    %0 = arith.cmpi eq, %arg1, %c0_i32 : i32
    %1 = arith.extui %0 : i1 to i32
    %c0_i32_0 = arith.constant 0 : i32
    %2 = arith.cmpi ne, %1, %c0_i32_0 : i32
    scf.if %2 {
      %cst_21 = arith.constant 0.000000e+00 : f32
      %28 = vector.broadcast %cst_21 : f32 to vector<1x2x8x128xf32>
      %c0_22 = arith.constant 0 : index
      %c0_23 = arith.constant 0 : index
      %c0_24 = arith.constant 0 : index
      %c0_25 = arith.constant 0 : index
      %29 = vector.load %arg4[%c0_22, %c0_23, %c0_24, %c0_25] : memref<1x2x8x128xf32, #tpu.memory_space<vmem>>, vector<1x2x8x128xf32>
      tpu.vector_store %arg4[%c0_22, %c0_23, %c0_24, %c0_25], %28 {strides = array<i32>} : memref<1x2x8x128xf32, #tpu.memory_space<vmem>>, vector<1x2x8x128xf32>,
    } else {
    }
    %c0 = arith.constant 0 : index
    %c0_1 = arith.constant 0 : index
    %3 = vector.load %arg2[%c0, %c0_1] : memref<16x128xf32, #tpu.memory_space<vmem>>, vector<16x128xf32>
    %4 = arith.negf %3 : vector<16x128xf32>
    %5 = math.exp %4 : vector<16x128xf32>
    %cst = arith.constant 1.000000e+00 : f32
    %6 = vector.broadcast %cst : f32 to vector<16x128xf32>
    %7 = arith.addf %6, %5 : vector<16x128xf32>
    %8 = arith.divf %6, %7 : vector<16x128xf32>
    %c0_2 = arith.constant 0 : index
    %c0_3 = arith.constant 0 : index
    %9 = vector.load %arg3[%c0_2, %c0_3] : memref<16x128xf32, #tpu.memory_space<vmem>>, vector<16x128xf32>
    %c0_4 = arith.constant 0 : index
    %c0_5 = arith.constant 0 : index
    %c0_6 = arith.constant 0 : index
    %c0_7 = arith.constant 0 : index
    %10 = vector.load %arg4[%c0_4, %c0_5, %c0_6, %c0_7] : memref<1x2x8x128xf32, #tpu.memory_space<vmem>>, vector<1x1x8x128xf32>
    %11 = vector.shape_cast %10 : vector<1x1x8x128xf32> to vector<8x128xf32>
    %12 = arith.mulf %8, %9 : vector<16x128xf32>
    %13 = vector.shape_cast %12 : vector<16x128xf32> to vector<2x8x128xf32>
    %cst_8 = arith.constant dense<0.000000e+00> : vector<8x128xf32>
    %14 = vector.multi_reduction <add>, %13, %cst_8 [0] : vector<2x8x128xf32> to vector<8x128xf32>
    %15 = arith.addf %11, %14 : vector<8x128xf32>
    %c0_9 = arith.constant 0 : index
    %c0_10 = arith.constant 0 : index
    %c0_11 = arith.constant 0 : index
    %c0_12 = arith.constant 0 : index
    %16 = vector.load %arg4[%c0_9, %c0_10, %c0_11, %c0_12] : memref<1x2x8x128xf32, #tpu.memory_space<vmem>>, vector<1x1x8x128xf32>
    %17 = vector.shape_cast %16 : vector<1x1x8x128xf32> to vector<8x128xf32>
    %18 = vector.shape_cast %15 : vector<8x128xf32> to vector<1x1x8x128xf32>
    tpu.vector_store %arg4[%c0_9, %c0_10, %c0_11, %c0_12], %18 {strides = array<i32>} : memref<1x2x8x128xf32, #tpu.memory_space<vmem>>, vector<1x1x8x128xf32>,
    %c0_13 = arith.constant 0 : index
    %c1 = arith.constant 1 : index
    %c0_14 = arith.constant 0 : index
    %c0_15 = arith.constant 0 : index
    %19 = vector.load %arg4[%c0_13, %c1, %c0_14, %c0_15] : memref<1x2x8x128xf32, #tpu.memory_space<vmem>>, vector<1x1x8x128xf32>
    %20 = vector.shape_cast %19 : vector<1x1x8x128xf32> to vector<8x128xf32>
    %21 = arith.addf %8, %9 : vector<16x128xf32>
    %22 = vector.shape_cast %21 : vector<16x128xf32> to vector<2x8x128xf32>
    %cst_16 = arith.constant dense<0.000000e+00> : vector<8x128xf32>
    %23 = vector.multi_reduction <add>, %22, %cst_16 [0] : vector<2x8x128xf32> to vector<8x128xf32>
    %24 = arith.addf %20, %23 : vector<8x128xf32>
    %c0_17 = arith.constant 0 : index
    %c1_18 = arith.constant 1 : index
    %c0_19 = arith.constant 0 : index
    %c0_20 = arith.constant 0 : index
    %25 = vector.load %arg4[%c0_17, %c1_18, %c0_19, %c0_20] : memref<1x2x8x128xf32, #tpu.memory_space<vmem>>, vector<1x1x8x128xf32>
    %26 = vector.shape_cast %25 : vector<1x1x8x128xf32> to vector<8x128xf32>
    %27 = vector.shape_cast %24 : vector<8x128xf32> to vector<1x1x8x128xf32>
    tpu.vector_store %arg4[%c0_17, %c1_18, %c0_19, %c0_20], %27 {strides = array<i32>} : memref<1x2x8x128xf32, #tpu.memory_space<vmem>>, vector<1x1x8x128xf32>,
    return
  }
  func.func @transform_0(%arg0: i32, %arg1: i32) -> (i32, i32) {
    %c1_i32 = arith.constant 1 : i32
    %0 = arith.muli %arg0, %c1_i32 : i32
    %1 = arith.addi %0, %arg1 : i32
    %c0_i32 = arith.constant 0 : i32
    %2 = arith.minsi %1, %c0_i32 : i32
    %c0_i32_0 = arith.constant 0 : i32
    %c0_i32_1 = arith.constant 0 : i32
    return %2, %c0_i32_0 : i32, i32
  }
  func.func @transform_1(%arg0: i32, %arg1: i32) -> (i32, i32) {
    %c1_i32 = arith.constant 1 : i32
    %0 = arith.muli %arg0, %c1_i32 : i32
    %1 = arith.addi %0, %arg1 : i32
    %c0_i32 = arith.constant 0 : i32
    %2 = arith.minsi %1, %c0_i32 : i32
    %c0_i32_0 = arith.constant 0 : i32
    %c0_i32_1 = arith.constant 0 : i32
    return %2, %c0_i32_0 : i32, i32
  }
  func.func @transform_2(%arg0: i32, %arg1: i32) -> (i32, i32, i32, i32) {
    %c0_i32 = arith.constant 0 : i32
    %c0_i32_0 = arith.constant 0 : i32
    %c0_i32_1 = arith.constant 0 : i32
    %c0_i32_2 = arith.constant 0 : i32
    return %arg0, %c0_i32, %c0_i32_0, %c0_i32_1 : i32, i32, i32, i32
  }
}

</mosaic_0001>

<bundles_post_ra>
// kernel: soft_dice_loss.1
= control target key start
LH: loop header
LB: loop body
LE: loop exit
PB: predicated region body
PF: predicated region fallthrough
CT: control target
= control target key end

     0   :  { %s172_s0 = inlined_call_operand.vmem [shape: f32[16,128], index: 0, kind: input, shape index: {}]   ;;  %s173_s1 = inlined_call_operand.vmem [shape: f32[16,128], index: 1, kind: input, shape index: {}]   ;;  %s174_s2 = inlined_call_operand.vmem [shape: f32[1,2,8,128], index: 2, kind: output, shape index: {}]  }
   0x1   :  { %v81_v0 = vld [vmem:[%s172_s0] sm:$0xff]  ;;  %v82_v1 = vld [vmem:[%s172_s0 + $0x8] sm:$0xff] }
   0x2   :  { %v126_v2 = vmul.f32 -1.442695, %v81_v0  ;;  %v127_v3 = vmul.f32 -1.442695, %v82_v1  ;;  %v95_v8 = vld [vmem:[%s173_s1] sm:$0xff]  ;;  %v96_v9 = vld [vmem:[%s173_s1 + $0x8] sm:$0xff] }
   0x4   :  { %131 = vpow2.f32 %v126_v2 }
   0x5   :  { %133 = vpow2.f32 %v127_v3 }
  0x11   :  { %v132_v4 = vpop.eup %131 }
  0x12   :  { %v134_v5 = vpop.eup %133  ;;  %v89_v6 = vadd.f32 1.0, %v132_v4 }
  0x13   :  { %v90_v7 = vadd.f32 1.0, %v134_v5 }
  0x14   :  { %135 = vrcp.f32 %v89_v6 }
  0x15   :  { %137 = vrcp.f32 %v90_v7 }
  0x21   :  { %v136_v10 = vpop.eup %135 }
  0x22   :  { %v138_v11 = vpop.eup %137  ;;  %v98_v12 = vmul.f32 %v136_v10, %v95_v8  ;;  %v105_v13 = vadd.f32 %v136_v10, %v95_v8 }
  0x23   :  { %v99_v14 = vmul.f32 %v138_v11, %v96_v9  ;;  %v106_v15 = vadd.f32 %v138_v11, %v96_v9 }
  0x25   :  { %v100_v16 = vadd.f32 %v99_v14, %v98_v12  ;;  %v107_v17 = vadd.f32 %v106_v15, %v105_v13 }
  0x27   :  { %102 = vst [vmem:[%s174_s2] sm:$0xff] %v100_v16  ;;  %129 = vst [vmem:[%s174_s2 + $0x8] sm:$0xff] %v107_v17 }

</bundles_post_ra>
